<compile_context>
chip_gen: v7x
topology: tpu7x:2x2x1
jax: 0.10.0
libtpu: 0.0.40
codegen_flags: <defaults>
</compile_context>

<pallas_src>
import math

import jax
import jax.numpy as jnp
from jax.experimental import pallas as pl
from jax.experimental.pallas import tpu as pltpu

_NEG_SLOPE = 0.01
_POS_SLOPE = 0.01

_SMALL_BYTES = 1 << 20      # below this, a single block is cheapest
_DEFAULT_TILE = 4 << 20     # ~4 MiB blocks amortize the grid-step overhead


def _dlrelu_kernel(x_ref, o_ref):
    x = x_ref[...]
    dt = x.dtype
    if _NEG_SLOPE == _POS_SLOPE:
        # Equal slopes s  =>  out = s*x + (1-s)*clip(x, 0, 1)
        #   x<0: s*x ; 0<=x<=1: x ; x>1: s*x + (1-s)
        # (min+max+2 mul+add: ~half the VPU ops of the compare/select form.)
        # Constants are rounded from f32 once so bf16 matches an fp32-constant impl.
        s = jnp.asarray(_POS_SLOPE, jnp.float32).astype(dt)
        c = jnp.asarray(1.0 - _POS_SLOPE, jnp.float32).astype(dt)
        clipped = jnp.minimum(jnp.maximum(x, jnp.asarray(0, dt)), jnp.asarray(1, dt))
        o_ref[...] = x * s + clipped * c
    else:
        zero = jnp.asarray(0, dt)
        one = jnp.asarray(1, dt)
        neg = jnp.asarray(_NEG_SLOPE, jnp.float32).astype(dt)
        pos = jnp.asarray(_POS_SLOPE, jnp.float32).astype(dt)
        addc = jnp.asarray(1.0 - _POS_SLOPE, jnp.float32).astype(dt)
        grad = jnp.where(x < zero, neg, jnp.where(x > one, pos, one))
        o_ref[...] = x * grad + jnp.where(x > one, addc, zero)


def _run(x_view, block_shape, grid, index_map, n_elems, *, donate=False):
    itemsize = jnp.dtype(x_view.dtype).itemsize
    blk_bytes = math.prod(block_shape) * itemsize
    # in + out, double buffered ~= 4x tile, plus headroom.  Set the scoped VMEM
    # limit explicitly: 4 MiB tiles overflow the v5e 16 MiB scoped default, and
    # the cap keeps us well under the v7x 64 MiB physical VMEM.
    vmem_limit = int(min(40 << 20, max(16 << 20, 4 * blk_bytes + (4 << 20))))
    return pl.pallas_call(
        _dlrelu_kernel,
        out_shape=jax.ShapeDtypeStruct(x_view.shape, x_view.dtype),
        grid_spec=pltpu.PrefetchScalarGridSpec(
            num_scalar_prefetch=0,
            grid=grid,
            in_specs=[pl.BlockSpec(block_shape, index_map)],
            out_specs=pl.BlockSpec(block_shape, index_map),
        ),
        compiler_params=pltpu.CompilerParams(
            dimension_semantics=("parallel",) * len(grid),
            vmem_limit_bytes=vmem_limit,
        ),
        cost_estimate=pl.CostEstimate(
            flops=5 * n_elems, transcendentals=0,
            bytes_accessed=2 * n_elems * itemsize),
        input_output_aliases=({0: 0} if donate else {}),
    )(x_view)


def _pick_cols(n):
    """Widest lane-dense (multiple-of-128) width that divides n exactly."""
    for c in (8192, 4096, 2048, 1024, 512, 256, 128):
        if n % c == 0:
            return c
    return None


def _pick_block_rows(rows, cols, itemsize, max_tile_bytes):
    """Rows per block: sublane multiple, <= max_tile_bytes, >=4 grid steps when big."""
    pack = max(1, 4 // itemsize)          # f32 -> 1, bf16 -> 2, int8/fp8 -> 4
    sub = 8 * pack                        # rows per fully packed sublane tile
    cap = max(sub, (max_tile_bytes // (cols * itemsize)) // sub * sub)
    total = rows * cols * itemsize
    if rows <= sub or (rows <= cap and total < _SMALL_BYTES):
        return rows                       # single full-extent block (legal)
    # Prefer >= 4 grid steps (>= 2 per TensorCore under v7x megacore sharding)
    # so DMA-in / compute / DMA-out stay overlapped; boundary block is masked.
    quarter = max(sub, (rows // 4) // sub * sub)
    return min(cap, quarter)


def dlrelu(x, *, max_tile_bytes=_DEFAULT_TILE, donate=False):
    """Elementwise DLReLU.  Any shape; returns same shape/dtype.

    donate=True adds input_output_aliases={0: 0}; only use it when the caller
    actually donates x (otherwise XLA inserts a defensive copy).
    """
    orig_shape = x.shape
    n = x.size
    if n == 0:
        return x
    itemsize = jnp.dtype(x.dtype).itemsize

    cols = _pick_cols(n)
    if cols is not None:
        # Fast path: lane-dense 2D view (free reshape), masked boundary block
        # instead of any padding pass.
        rows = n // cols
        blk_rows = _pick_block_rows(rows, cols, itemsize, max_tile_bytes)
        x2d = jnp.reshape(x, (rows, cols))
        out = _run(x2d, (blk_rows, cols), (pl.cdiv(rows, blk_rows),),
                   lambda i: (i, 0), n, donate=donate)
        return out.reshape(orig_shape)

    # Ragged element count (n not a multiple of 128): keep the trailing (R, C)
    # dims as a full-extent block (legal even when unaligned) and tile the
    # collapsed leading dims -> exactly 2n HBM bytes, no pad/slice passes.
    if x.ndim >= 2:
        R, C = orig_shape[-2], orig_shape[-1]
        lead = n // (R * C)
    else:
        R, C, lead = 1, n, 1
    x3 = jnp.reshape(x, (lead, R, C))
    rc_bytes = R * C * itemsize

    if rc_bytes <= max_tile_bytes:
        blk_lead = max(1, min(lead, max_tile_bytes // rc_bytes))
        if n * itemsize >= _SMALL_BYTES and lead >= 4:
            blk_lead = min(blk_lead, max(1, lead // 4))    # >= 4 grid steps
        out = _run(x3, (blk_lead, R, C), (pl.cdiv(lead, blk_lead),),
                   lambda i: (i, 0, 0), n, donate=donate)
        return out.reshape(orig_shape)

    if C * 8 * itemsize <= max_tile_bytes:
        # Trailing plane too big for one block: tile R in multiples of 8
        # (masked boundary), keep the unaligned last dim at full extent.
        blk_r = (max_tile_bytes // (C * itemsize)) // 8 * 8
        out = _run(x3, (1, blk_r, C), (lead, pl.cdiv(R, blk_r)),
                   lambda i, j: (i, j, 0), n, donate=donate)
        return out.reshape(orig_shape)

    # Degenerate ragged case (enormous, non-128-aligned last dim): fall back to
    # one pad + slice pass around a lane-dense kernel.
    cols = 1024
    rows = pl.cdiv(n, cols)
    flat = jnp.pad(jnp.ravel(x), (0, rows * cols - n)).reshape(rows, cols)
    blk_rows = _pick_block_rows(rows, cols, itemsize, max_tile_bytes)
    out2d = _run(flat, (blk_rows, cols), (pl.cdiv(rows, blk_rows),),
                 lambda i: (i, 0), rows * cols)
    return out2d.reshape(-1)[:n].reshape(orig_shape)


def _reference(x):
    dt = x.dtype
    zero, one = jnp.asarray(0, dt), jnp.asarray(1, dt)
    neg = jnp.asarray(_NEG_SLOPE, dt)
    pos = jnp.asarray(_POS_SLOPE, dt)
    grad = jnp.where(x < zero, neg, jnp.where(x > one, pos, one))
    add = jnp.where(x > one, jnp.asarray(1.0 - _POS_SLOPE, dt), zero)
    return x * grad + add


if __name__ == "__main__":
    key = jax.random.PRNGKey(0)
    k1, k2, k3, k4 = jax.random.split(key, 4)

    # NCHW input like the PyTorch module; scaled so values hit all three
    # regimes (x < 0, 0 <= x <= 1, x > 1).
    x = jax.random.normal(k1, (2, 4, 16, 16), dtype=jnp.float32) * 2.0
    out = jax.block_until_ready(dlrelu(x))
    assert out.shape == x.shape and out.dtype == x.dtype
    assert jnp.allclose(out, _reference(x), atol=1e-6, rtol=1e-6)

    # Lane-dense multi-step path (>= 4 grid steps).
    x2 = jax.random.normal(k2, (4, 8, 128, 128), dtype=jnp.float32) * 2.0
    out2 = jax.block_until_ready(dlrelu(x2))
    assert jnp.allclose(out2, _reference(x2), atol=1e-6, rtol=1e-6)

    # Ragged element count: collapsed-leading-dim path, no pad/slice passes.
    x3 = jax.random.normal(k3, (3, 5, 7, 11), dtype=jnp.float32) * 2.0
    out3 = jax.block_until_ready(dlrelu(x3))
    assert out3.shape == x3.shape
    assert jnp.allclose(out3, _reference(x3), atol=1e-6, rtol=1e-6)

    # Ragged + big enough to exercise the masked leading-dim grid (>= 4 steps).
    x4 = jax.random.normal(k4, (6, 7, 129, 67), dtype=jnp.float32) * 2.0
    out4 = jax.block_until_ready(dlrelu(x4))
    assert jnp.allclose(out4, _reference(x4), atol=1e-6, rtol=1e-6)

    # bfloat16 path (dtype-aware sublane packing, f32-rounded constants).
    x5 = (jax.random.normal(k2, (2, 4, 16, 16), dtype=jnp.float32) * 2.0
          ).astype(jnp.bfloat16)
    out5 = jax.block_until_ready(dlrelu(x5))
    assert out5.dtype == jnp.bfloat16
    assert jnp.allclose(out5.astype(jnp.float32),
                        _reference(x5).astype(jnp.float32),
                        atol=1e-2, rtol=1e-2)

    print("KERNEL_OK")
</pallas_src>

<mosaic_0001>
module attributes {stable_mosaic.version = 11 : i64} {
  func.func @_dlrelu_kernel(%arg0: i32, %arg1: memref<1x2048xf32, #tpu.memory_space<vmem>>, %arg2: memref<1x2048xf32, #tpu.memory_space<vmem>>) attributes {dimension_semantics = [#tpu.dimension_semantics<parallel>], iteration_bounds = array<i64: 1>, scalar_prefetch = 0 : i64, scratch_operands = 0 : i64, tpu.core_type = #tpu.core_type<tc>, window_params = [{transform_indices = @transform_0, window_bounds = array<i64: 1, 2048>}, {transform_indices = @transform_1, window_bounds = array<i64: 1, 2048>}]} {
    %c0 = arith.constant 0 : index
    %c0_0 = arith.constant 0 : index
    %0 = vector.load %arg1[%c0, %c0_0] : memref<1x2048xf32, #tpu.memory_space<vmem>>, vector<1x2048xf32>
    %cst = arith.constant 0.000000e+00 : f32
    %1 = vector.broadcast %cst : f32 to vector<1x2048xf32>
    %2 = arith.maximumf %0, %1 : vector<1x2048xf32>
    %cst_1 = arith.constant 1.000000e+00 : f32
    %3 = vector.broadcast %cst_1 : f32 to vector<1x2048xf32>
    %4 = arith.minimumf %2, %3 : vector<1x2048xf32>
    %cst_2 = arith.constant 0.00999999977 : f32
    %5 = vector.broadcast %cst_2 : f32 to vector<1x2048xf32>
    %6 = arith.mulf %0, %5 : vector<1x2048xf32>
    %cst_3 = arith.constant 9.900000e-01 : f32
    %7 = vector.broadcast %cst_3 : f32 to vector<1x2048xf32>
    %8 = arith.mulf %4, %7 : vector<1x2048xf32>
    %9 = arith.addf %6, %8 : vector<1x2048xf32>
    %c0_4 = arith.constant 0 : index
    %c0_5 = arith.constant 0 : index
    %10 = vector.load %arg2[%c0_4, %c0_5] : memref<1x2048xf32, #tpu.memory_space<vmem>>, vector<1x2048xf32>
    tpu.vector_store %arg2[%c0_4, %c0_5], %9 {strides = array<i32>} : memref<1x2048xf32, #tpu.memory_space<vmem>>, vector<1x2048xf32>,
    return
  }
  func.func @transform_0(%arg0: i32) -> (i32, i32) {
    %c0_i32 = arith.constant 0 : i32
    %c0_i32_0 = arith.constant 0 : i32
    return %arg0, %c0_i32 : i32, i32
  }
  func.func @transform_1(%arg0: i32) -> (i32, i32) {
    %c0_i32 = arith.constant 0 : i32
    %c0_i32_0 = arith.constant 0 : i32
    return %arg0, %c0_i32 : i32, i32
  }
}

</mosaic_0001>

<bundles_post_ra>
// kernel: tpu_custom_call.1
= control target key start
LH: loop header
LB: loop body
LE: loop exit
PB: predicated region body
PF: predicated region fallthrough
CT: control target
= control target key end

     0   :  { %6 = vsyncpa [#allocation3], 0  ;;  %s136_s0 = inlined_call_operand.hbm [shape: f32[1,2048], index: 0, kind: input, shape index: {}]   ;;  %s137_s1 = inlined_call_operand.hbm [shape: f32[1,2048], index: 1, kind: output, shape index: {}]  }
   0x1   :  { %7 = vsyncpa [#allocation4], 0  ;;  %s100_s6 = smov [#allocation2]   ;;  %s52_s10 = scalar_lea.hbm %s136_s0, 256 }
   0x2   :  { %s14_s7 = sshll.u32 %s100_s6, 4  ;;  %p53_p0 = scmp.ne.s32.totalorder %s136_s0, %s52_s10  ;;  %s15_s7 = int_to_ptr.vmem [resolvable:$true] %s14_s7 }
   0x3   :  { %p56_p1 = scmp.lt.u32.totalorder %s52_s10, %s136_s0 }
   0x5   :  { %p58_p2 = pnand %p56_p1, %p53_p0 }
   0x7   :  { %61 = shalt.err (!%p58_p2)
}
   0x8   :  { %s62_s15 = scalar_lea.vmem %s15_s7, 256  ;;  %p67_p4 = scmp.lt.s32.totalorder %s15_s7, %s15_s7 }
   0x9   :  { %p63_p3 = scmp.ne.s32.totalorder %s15_s7, %s62_s15  ;;  %p68_p5 = scmp.lt.s32.totalorder %s62_s15, %s62_s15 }
   0xb   :  { %p69_p6 = por %p68_p5, %p67_p4 }
   0xd   :  { %p70_p7 = pnand %p69_p6, %p63_p3 }
   0xf   :  { %73 = shalt.err (!%p70_p7)
}
  0x10   :  { %17 = dma.hbm_to_vmem [thread:$0]  %s136_s0, 256, %s15_s7, [#allocation3]  }
  0x11   :  { %96 = dma.done.wait [#allocation3], 256  }
  0x12   :  { %97 = vsyncadd [#allocation3], 4294967040  ;;  %v21_v0 = vld [vmem:[#allocation2] sm:$0xff]  ;;  %v22_v1 = vld [vmem:[#allocation2 + $0x8] sm:$0xff]  ;;  %s101_s18 = smov [#allocation5]  }
  0x13   :  { %v23_v2 = vmax.f32 %v21_v0, 0.0  ;;  %v24_v3 = vmax.f32 %v22_v1, 0.0  ;;  %v27_v5 = vmul.f32 0.01, %v21_v0  ;;  %v28_v7 = vmul.f32 0.01, %v22_v1 }
  0x14   :  { %s41_s19 = sshll.u32 %s101_s18, 4  ;;  %s42_s19 = int_to_ptr.vmem [resolvable:$true] %s41_s19 }
  0x15   :  { %v25_v4 = vmin.f32 %v23_v2, 1.0  ;;  %v26_v6 = vmin.f32 %v24_v3, 1.0  ;;  %s74_s0 = scalar_lea.vmem %s42_s19, 256  ;;  %p79_p9 = scmp.lt.s32.totalorder %s42_s19, %s42_s19 }
  0x16   :  { %p75_p8 = scmp.ne.s32.totalorder %s42_s19, %s74_s0  ;;  %p80_p10 = scmp.lt.s32.totalorder %s74_s0, %s74_s0 }
  0x17   :  { %v29_v8 = vmul.f32 0.99, %v25_v4  ;;  %v30_v9 = vmul.f32 0.99, %v26_v6 }
  0x18   :  { %p81_p11 = por %p80_p10, %p79_p9 }
  0x19   :  { %v31_v10 = vadd.f32 %v29_v8, %v27_v5  ;;  %v32_v11 = vadd.f32 %v30_v9, %v28_v7 }
  0x1a   :  { %p82_p12 = pnand %p81_p11, %p75_p8 }
  0x1b   :  { %33 = vst [vmem:[#allocation5] sm:$0xff] %v31_v10  ;;  %34 = vst [vmem:[#allocation5 + $0x8] sm:$0xff] %v32_v11 }
  0x1c   :  { %85 = shalt.err (!%p82_p12)
}
  0x1d   :  { %s86_s22 = scalar_lea.hbm %s137_s1, 256 }
  0x1e   :  { %p87_p13 = scmp.ne.s32.totalorder %s137_s1, %s86_s22  ;;  %p90_p0 = scmp.lt.u32.totalorder %s86_s22, %s137_s1 }
  0x20   :  { %p92_p1 = pnand %p90_p0, %p87_p13 }
  0x22   :  { %95 = shalt.err (!%p92_p1)
}
  0x23   :  { %44 = dma.vmem_to_hbm [thread:$0]  %s42_s19, 256, %s137_s1, [#allocation4]  }
  0x24   :  { %98 = dma.done.wait [#allocation4], 256  }
  0x25   :  { %99 = vsyncadd [#allocation4], 4294967040 }
  0x26   :  { %48 = vsyncpa [#allocation3], 1 }
  0x27   :  { %49 = vsyncpa [#allocation4], 1 }

</bundles_post_ra>
